<compile_context>
chip_gen: v6e
topology: v6e:2x2x1
jax: 0.10.0
libtpu: 0.0.40
codegen_flags: <defaults>
</compile_context>

<pallas_src>
import jax
import jax.numpy as jnp
from jax.experimental import pallas as pl
from jax.experimental.pallas import tpu as pltpu

_LN_EPS = 1e-6
_MM_ROWS = 512          # row-tile cap for matmul / layernorm kernels
_DF_ROWS = 2048         # row-tile cap for the data-fidelity kernel
_BB_ROWS = 2048         # flattened-row target per tile in the fused conv kernels
_VMEM_LIMIT = 40 * 1024 * 1024   # v7x-safe (64 MiB physical per TC)


def _cp(ndim):
    return pltpu.CompilerParams(
        dimension_semantics=("parallel",) * ndim,
        vmem_limit_bytes=_VMEM_LIMIT)


def _choose_rows(m, cap):
    """Pick a sublane tile (multiple of 8, <= cap) and padded row count."""
    m8 = ((m + 7) // 8) * 8
    if m8 <= cap:
        return m8, m8
    mp = ((m + cap - 1) // cap) * cap
    return cap, mp


def _choose_th(h, w):
    """Largest divisor of H such that th*W stays under the row budget."""
    th_max = max(1, _BB_ROWS // w)
    th = 1
    for d in range(1, h + 1):
        if h % d == 0 and d <= th_max:
            th = d
    return th


def _gelu_exact(x):
    # Exact (erf-form) GELU.  erf via Abramowitz-Stegun 7.1.26 (|err| < 1.5e-7),
    # built from exp/mul/add only so it always lowers in Mosaic.
    z = x * 0.7071067811865476
    a = jnp.abs(z)
    t = 1.0 / (1.0 + 0.3275911 * a)
    poly = t * (0.254829592 + t * (-0.284496736 + t * (1.421413741
                + t * (-1.453152027 + t * 1.061405429))))
    erf = jnp.sign(z) * (1.0 - poly * jnp.exp(-a * a))
    return 0.5 * x * (1.0 + erf)


# ----------------------------------------------------------------------------
# Pallas kernels (all operate channels-last; channels on the 128-lane axis)
# ----------------------------------------------------------------------------
def _matmul_kernel(x_ref, w_ref, b_ref, o_ref):
    # [tm, K] @ [K, N] + [1, N]  with bf16 MXU inputs and f32 accumulation.
    o_ref[...] = (jnp.dot(x_ref[...].astype(jnp.bfloat16), w_ref[...],
                          preferred_element_type=jnp.float32)
                  + b_ref[...]).astype(o_ref.dtype)


def _ln_kernel(x_ref, w_ref, b_ref, o_ref):
    # channels_first LayerNorm over C (last dim in channels-last layout).
    x = x_ref[...]
    u = jnp.mean(x, axis=-1, keepdims=True)
    xc = x - u
    s = jnp.mean(xc * xc, axis=-1, keepdims=True)
    o_ref[...] = xc * jax.lax.rsqrt(s + _LN_EPS) * w_ref[...] + b_ref[...]


def _bb_core_kernel(x_ref, dww_ref, dwb_ref, lnw_ref, lnb_ref,
                    w1_ref, b1_ref, w2_ref, b2_ref, o_ref):
    """Fused BasicBlock core: dwconv3x3 + LN(channels) + pw1 + GELU + pw2.

    x_ref:  (H+2, W+2, C)  zero-padded image (whole padded image per batch,
            resident in VMEM; the h-grid axis slices it in-kernel).
    o_ref:  (th, W, C)     pre-SE output tile.
    """
    th, W, C = o_ref.shape
    h0 = pl.program_id(1) * th
    xt = x_ref[pl.ds(h0, th + 2)]                     # (th+2, W+2, C)
    dww = dww_ref[...]                                # (9, C)

    acc = jnp.zeros((th, W, C), jnp.float32)
    for t in range(9):
        ky, kx = divmod(t, 3)
        acc = acc + xt[ky:ky + th, kx:kx + W, :] * dww[t]
    acc = acc + dwb_ref[...]

    u = jnp.mean(acc, axis=-1, keepdims=True)
    xc = acc - u
    s = jnp.mean(xc * xc, axis=-1, keepdims=True)
    xn = xc * jax.lax.rsqrt(s + _LN_EPS) * lnw_ref[...] + lnb_ref[...]

    flat = xn.reshape(th * W, C).astype(jnp.bfloat16)
    h = jnp.dot(flat, w1_ref[...], preferred_element_type=jnp.float32) + b1_ref[...]
    g = _gelu_exact(h).astype(jnp.bfloat16)
    out = jnp.dot(g, w2_ref[...], preferred_element_type=jnp.float32) + b2_ref[...]
    o_ref[...] = out.reshape(th, W, C)


def _conv3x3_kernel(x_ref, w_ref, b_ref, o_ref):
    """3x3 conv (pad=1) accumulated over the 9 taps in-kernel (no HBM im2col)."""
    th, W, Cout = o_ref.shape
    Cin = x_ref.shape[-1]
    h0 = pl.program_id(1) * th
    xt = x_ref[pl.ds(h0, th + 2)]                     # (th+2, W+2, Cin)
    w = w_ref[...]                                    # (9, Cin, Cout) bf16
    acc = jnp.zeros((th * W, Cout), jnp.float32)
    for t in range(9):
        ky, kx = divmod(t, 3)
        tap = xt[ky:ky + th, kx:kx + W, :].reshape(th * W, Cin).astype(jnp.bfloat16)
        acc = acc + jnp.dot(tap, w[t], preferred_element_type=jnp.float32)
    o_ref[...] = (acc + b_ref[...]).reshape(th, W, Cout)


def _datafid_kernel(x_ref, phi_ref, y_ref, o_ref):
    # At(A(x, Phi) - y, Phi), channels-last: rows x 28 channels.
    x = x_ref[...]
    phi = phi_ref[...]
    r = jnp.sum(x * phi, axis=-1, keepdims=True) - y_ref[...]
    o_ref[...] = r * phi


# ----------------------------------------------------------------------------
# Kernel wrappers (jit-ed so each unique shape compiles exactly once)
# ----------------------------------------------------------------------------
@jax.jit
def pmatmul(x, w, b):
    """x:[M,K] (f32) @ w:[K,N] (bf16) + b:[N] -> [M,N] f32."""
    M, K = x.shape
    N = w.shape[1]
    tm, Mp = _choose_rows(M, _MM_ROWS)
    xp = x if Mp == M else jnp.pad(x, ((0, Mp - M), (0, 0)))
    out = pl.pallas_call(
        _matmul_kernel,
        out_shape=jax.ShapeDtypeStruct((Mp, N), jnp.float32),
        grid=(Mp // tm,),
        in_specs=[pl.BlockSpec((tm, K), lambda i: (i, 0)),
                  pl.BlockSpec((K, N), lambda i: (0, 0)),
                  pl.BlockSpec((1, N), lambda i: (0, 0))],
        out_specs=pl.BlockSpec((tm, N), lambda i: (i, 0)),
        compiler_params=_cp(1),
    )(xp, w, b.reshape(1, N))
    return out if Mp == M else out[:M]


@jax.jit
def pln_rows(xm, w, b):
    """LayerNorm over the last dim of a [M, C] matrix (biased variance)."""
    M, C = xm.shape
    tm, Mp = _choose_rows(M, _MM_ROWS)
    xp = xm if Mp == M else jnp.pad(xm, ((0, Mp - M), (0, 0)))
    out = pl.pallas_call(
        _ln_kernel,
        out_shape=jax.ShapeDtypeStruct((Mp, C), jnp.float32),
        grid=(Mp // tm,),
        in_specs=[pl.BlockSpec((tm, C), lambda i: (i, 0)),
                  pl.BlockSpec((1, C), lambda i: (0, 0)),
                  pl.BlockSpec((1, C), lambda i: (0, 0))],
        out_specs=pl.BlockSpec((tm, C), lambda i: (i, 0)),
        compiler_params=_cp(1),
    )(xp, w.reshape(1, C), b.reshape(1, C))
    return out if Mp == M else out[:M]


def _bb_core(x, dw_w, dw_b, ln_w, ln_b, pw1_w, pw1_b, pw2_w, pw2_b):
    """Fused BasicBlock core on a channels-last [B,H,W,C] tensor."""
    B, H, W, C = x.shape
    C4 = pw1_w.shape[1]
    xp = jnp.pad(x, ((0, 0), (1, 1), (1, 1), (0, 0)))     # zero pad (conv pad=1)
    th = _choose_th(H, W)
    return pl.pallas_call(
        _bb_core_kernel,
        out_shape=jax.ShapeDtypeStruct((B, H, W, C), jnp.float32),
        grid=(B, H // th),
        in_specs=[
            pl.BlockSpec((None, H + 2, W + 2, C), lambda bi, hi: (bi, 0, 0, 0)),
            pl.BlockSpec((9, C), lambda bi, hi: (0, 0)),
            pl.BlockSpec((1, C), lambda bi, hi: (0, 0)),
            pl.BlockSpec((1, C), lambda bi, hi: (0, 0)),
            pl.BlockSpec((1, C), lambda bi, hi: (0, 0)),
            pl.BlockSpec((C, C4), lambda bi, hi: (0, 0)),
            pl.BlockSpec((1, C4), lambda bi, hi: (0, 0)),
            pl.BlockSpec((C4, C), lambda bi, hi: (0, 0)),
            pl.BlockSpec((1, C), lambda bi, hi: (0, 0)),
        ],
        out_specs=pl.BlockSpec((None, th, W, C), lambda bi, hi: (bi, hi, 0, 0)),
        compiler_params=_cp(2),
    )(xp, dw_w, dw_b.reshape(1, C), ln_w.reshape(1, C), ln_b.reshape(1, C),
      pw1_w, pw1_b.reshape(1, C4), pw2_w, pw2_b.reshape(1, C))


@jax.jit
def conv3x3(x, wmat, b):
    """3x3 conv, pad=1.  x:[B,H,W,Cin], wmat:[9,Cin,Cout] bf16, b:[Cout]."""
    B, H, W, Cin = x.shape
    Cout = wmat.shape[-1]
    xp = jnp.pad(x, ((0, 0), (1, 1), (1, 1), (0, 0)))
    th = _choose_th(H, W)
    return pl.pallas_call(
        _conv3x3_kernel,
        out_shape=jax.ShapeDtypeStruct((B, H, W, Cout), jnp.float32),
        grid=(B, H // th),
        in_specs=[
            pl.BlockSpec((None, H + 2, W + 2, Cin), lambda bi, hi: (bi, 0, 0, 0)),
            pl.BlockSpec((9, Cin, Cout), lambda bi, hi: (0, 0, 0)),
            pl.BlockSpec((1, Cout), lambda bi, hi: (0, 0)),
        ],
        out_specs=pl.BlockSpec((None, th, W, Cout), lambda bi, hi: (bi, hi, 0, 0)),
        compiler_params=_cp(2),
    )(xp, wmat, b.reshape(1, Cout))


@jax.jit
def data_fidelity(x, Phi, y):
    """At(A(x, Phi) - y, Phi) fused, channels-last: x,Phi:[B,R,W,28], y:[B,R,W]."""
    B, R, W, nC = x.shape
    M = B * R * W
    xm = x.reshape(M, nC)
    pm = Phi.reshape(M, nC)
    ym = y.reshape(M, 1)
    tm, Mp = _choose_rows(M, _DF_ROWS)
    if Mp != M:
        xm = jnp.pad(xm, ((0, Mp - M), (0, 0)))
        pm = jnp.pad(pm, ((0, Mp - M), (0, 0)))
        ym = jnp.pad(ym, ((0, Mp - M), (0, 0)))
    out = pl.pallas_call(
        _datafid_kernel,
        out_shape=jax.ShapeDtypeStruct((Mp, nC), jnp.float32),
        grid=(Mp // tm,),
        in_specs=[pl.BlockSpec((tm, nC), lambda i: (i, 0)),
                  pl.BlockSpec((tm, nC), lambda i: (i, 0)),
                  pl.BlockSpec((tm, 1), lambda i: (i, 0))],
        out_specs=pl.BlockSpec((tm, nC), lambda i: (i, 0)),
        compiler_params=_cp(1),
    )(xm, pm, ym)
    return out[:M].reshape(B, R, W, nC)


# ----------------------------------------------------------------------------
# Layer ops (channels-last in, channels-last out)
# ----------------------------------------------------------------------------
def conv1x1(x, wmat, b):                     # wmat: [Cin, Cout] bf16
    B, H, W, C = x.shape
    return pmatmul(x.reshape(B * H * W, C), wmat, b).reshape(B, H, W, -1)


@jax.jit
def conv2x2_s2(x, wmat, b):                  # wmat: [4*Cin, Cout] bf16, (ky,kx,c)
    B, H, W, C = x.shape
    Cout = wmat.shape[1]
    xr = x.reshape(B, H // 2, 2, W // 2, 2, C).transpose(0, 1, 3, 2, 4, 5)
    xr = xr.reshape(B * (H // 2) * (W // 2), 4 * C)
    return pmatmul(xr, wmat, b).reshape(B, H // 2, W // 2, Cout)


@jax.jit
def convT2x2_s2(x, wmat, b):                 # wmat: [Cin, 4*Cout] bf16, (ky,kx,o)
    B, H, W, C = x.shape
    Cout = wmat.shape[1] // 4
    t = pmatmul(x.reshape(B * H * W, C), wmat, jnp.tile(b, 4))
    t = t.reshape(B, H, W, 2, 2, Cout).transpose(0, 1, 3, 2, 4, 5)
    return t.reshape(B, 2 * H, 2 * W, Cout)


def ln_cl(x, w, b):                          # channels_first LN over channels
    B, H, W, C = x.shape
    return pln_rows(x.reshape(B * H * W, C), w, b).reshape(B, H, W, C)


@jax.jit
def basic_block(p, x):
    """BasicBlock: fused dwconv3x3+LN+pw1+GELU+pw2 kernel, then SE + residual."""
    z = _bb_core(x, p['dw_w'], p['dw_b'], p['ln_w'], p['ln_b'],
                 p['pw1_w'], p['pw1_b'], p['pw2_w'], p['pw2_b'])
    # SELayer: tiny [B, C] FCs -- kept in plain XLA (a pallas launch would
    # dominate the 2-128 element matmuls).
    yv = jnp.mean(z, axis=(1, 2))
    yv = jax.nn.relu(yv @ p['se_fc1'].T)
    yv = jax.nn.sigmoid(yv @ p['se_fc2'].T)
    return z * yv[:, None, None, :] + x


# ----------------------------------------------------------------------------
# Spectral shift helpers (single gather instead of 28 rolls)
# ----------------------------------------------------------------------------
@jax.jit
def shift_3d(x):                             # roll channel i by +2i along W
    W, nC = x.shape[2], x.shape[3]
    idx = (jnp.arange(W)[:, None] - 2 * jnp.arange(nC)[None, :]) % W
    return jnp.take_along_axis(x, idx[None, None, :, :], axis=2)


@jax.jit
def shift_back_3d(x):                        # roll channel i by -2i along W
    W, nC = x.shape[2], x.shape[3]
    idx = (jnp.arange(W)[:, None] + 2 * jnp.arange(nC)[None, :]) % W
    return jnp.take_along_axis(x, idx[None, None, :, :], axis=2)


# ----------------------------------------------------------------------------
# Parameter initialization (deterministic, synthetic) + torch->kernel layouts
# ----------------------------------------------------------------------------
class ParamRNG:
    def __init__(self, key):
        self._key = key

    def normal(self, shape, std=0.02):
        self._key, sub = jax.random.split(self._key)
        return std * jax.random.normal(sub, shape, jnp.float32)


def cvt_1x1(w):      # torch [Cout, Cin] -> [Cin, Cout] bf16
    return w.T.astype(jnp.bfloat16)


def cvt_3x3(w):      # torch [Cout, Cin, 3, 3] -> [9, Cin, Cout] bf16 (t=ky*3+kx)
    co, ci = w.shape[0], w.shape[1]
    return w.transpose(2, 3, 1, 0).reshape(9, ci, co).astype(jnp.bfloat16)


def cvt_dw(w):       # torch depthwise [C, 3, 3] -> [9, C] f32
    return w.reshape(w.shape[0], 9).T


def cvt_2x2(w):      # torch [Cout, Cin, 2, 2] -> [4*Cin, Cout] bf16, order (ky,kx,c)
    co, ci = w.shape[0], w.shape[1]
    return w.transpose(2, 3, 1, 0).reshape(4 * ci, co).astype(jnp.bfloat16)


def cvt_T2x2(w):     # torch [Cin, Cout, 2, 2] -> [Cin, 4*Cout] bf16, order (ky,kx,o)
    ci, co = w.shape[0], w.shape[1]
    return w.transpose(0, 2, 3, 1).reshape(ci, 4 * co).astype(jnp.bfloat16)


def init_bb(rng, d):
    r = max(d // 16, 1)
    return dict(
        dw_w=cvt_dw(rng.normal((d, 3, 3))), dw_b=jnp.zeros((d,), jnp.float32),
        ln_w=jnp.ones((d,), jnp.float32), ln_b=jnp.zeros((d,), jnp.float32),
        pw1_w=cvt_1x1(rng.normal((4 * d, d))), pw1_b=jnp.zeros((4 * d,), jnp.float32),
        pw2_w=cvt_1x1(rng.normal((d, 4 * d))), pw2_b=jnp.zeros((d,), jnp.float32),
        se_fc1=rng.normal((r, d)), se_fc2=rng.normal((d, r)),
    )


def init_unit(rng, d):
    return dict(in_w=cvt_1x1(rng.normal((d, 28))), in_b=jnp.zeros((d,), jnp.float32),
                bb1=init_bb(rng, d), bb2=init_bb(rng, d),
                out_w=cvt_1x1(rng.normal((28, d))), out_b=jnp.zeros((28,), jnp.float32))


def init_iter(rng, d):
    return dict(step=jnp.full((1, 1, 1, 28), 0.001, jnp.float32),
                lamd=jnp.full((1, 1, 1, 28), 0.001, jnp.float32),
                mu=jnp.full((1, 1, 1, 28), 1.0, jnp.float32),
                unit1=init_unit(rng, d), unit2=init_unit(rng, d))


def init_ublock(rng, d):
    def ln(c):
        return jnp.ones((c,), jnp.float32), jnp.zeros((c,), jnp.float32)

    p = {}
    p['d1_bb'] = init_bb(rng, d)
    p['d1_w'] = cvt_2x2(rng.normal((2 * d, d, 2, 2)))
    p['d1_b'] = jnp.zeros((2 * d,), jnp.float32)
    p['d1_lnw'], p['d1_lnb'] = ln(2 * d)
    p['d2_bb'] = init_bb(rng, 2 * d)
    p['d2_w'] = cvt_2x2(rng.normal((4 * d, 2 * d, 2, 2)))
    p['d2_b'] = jnp.zeros((4 * d,), jnp.float32)
    p['d2_lnw'], p['d2_lnb'] = ln(4 * d)
    p['d3_bb'] = init_bb(rng, 4 * d)
    p['d3_w'] = cvt_2x2(rng.normal((8 * d, 4 * d, 2, 2)))
    p['d3_b'] = jnp.zeros((8 * d,), jnp.float32)
    p['d3_lnw'], p['d3_lnb'] = ln(8 * d)
    p['mid_bb'] = init_bb(rng, 8 * d)
    p['u1_w'] = cvt_T2x2(rng.normal((8 * d, 4 * d, 2, 2)))
    p['u1_b'] = jnp.zeros((4 * d,), jnp.float32)
    p['u1_lnw'], p['u1_lnb'] = ln(4 * d)
    p['u1_bb'] = init_bb(rng, 4 * d)
    p['u2_w'] = cvt_T2x2(rng.normal((4 * d, 2 * d, 2, 2)))
    p['u2_b'] = jnp.zeros((2 * d,), jnp.float32)
    p['u2_lnw'], p['u2_lnb'] = ln(2 * d)
    p['u2_bb'] = init_bb(rng, 2 * d)
    p['u3_w'] = cvt_T2x2(rng.normal((2 * d, d, 2, 2)))
    p['u3_b'] = jnp.zeros((d,), jnp.float32)
    p['u3_lnw'], p['u3_lnb'] = ln(d)
    p['u3_bb'] = init_bb(rng, d)
    return p


def init_usbnet(rng, dim, depth):
    return dict(
        fution_w=cvt_1x1(rng.normal((28, 56))), fution_b=jnp.zeros((28,), jnp.float32),
        pre_w=cvt_3x3(rng.normal((dim, 28, 3, 3))), pre_b=jnp.zeros((dim,), jnp.float32),
        pre_bb=init_bb(rng, dim),
        iters=[init_iter(rng, dim) for _ in range(depth)],
        blocks0=[dict(w=cvt_3x3(rng.normal((dim, 28, 3, 3))),
                      b=jnp.zeros((dim,), jnp.float32),
                      bb=init_bb(rng, dim)) for _ in range(depth)],
        blocks1=[init_ublock(rng, dim) for _ in range(depth)],
        blocks2=[dict(lnw=jnp.ones((dim,), jnp.float32),
                      lnb=jnp.zeros((dim,), jnp.float32),
                      bb=init_bb(rng, dim),
                      w=cvt_3x3(rng.normal((28, dim, 3, 3))),
                      b=jnp.zeros((28,), jnp.float32)) for _ in range(depth)],
        mid=dict(w=cvt_3x3(rng.normal((dim, depth * 28, 3, 3))),
                 b=jnp.zeros((dim,), jnp.float32),
                 lnw=jnp.ones((dim,), jnp.float32),
                 lnb=jnp.zeros((dim,), jnp.float32),
                 bb=init_bb(rng, dim)),
        post=dict(ublock=init_ublock(rng, 2 * dim),
                  lnw=jnp.ones((2 * dim,), jnp.float32),
                  lnb=jnp.zeros((2 * dim,), jnp.float32),
                  bb1=init_bb(rng, 2 * dim),
                  w1=cvt_3x3(rng.normal((dim, 2 * dim, 3, 3))),
                  b1=jnp.zeros((dim,), jnp.float32),
                  bb2=init_bb(rng, dim),
                  w2=cvt_3x3(rng.normal((28, dim, 3, 3))),
                  b2=jnp.zeros((28,), jnp.float32)),
    )


# ----------------------------------------------------------------------------
# Module forwards (all channels-last)
# ----------------------------------------------------------------------------
def unit(p, x):
    x = conv1x1(x, p['in_w'], p['in_b'])
    x = basic_block(p['bb1'], x)
    x = basic_block(p['bb2'], x)
    return conv1x1(x, p['out_w'], p['out_b'])


def iteration_module(p, xk, dk, bk, y, Phi_cl):
    # NOTE: Phi_s is unused, exactly as in the PyTorch IterationModule.forward.
    xk_t1 = shift_3d(xk)
    xk_t1 = data_fidelity(xk_t1, Phi_cl, y)            # At(A(x,Phi) - y, Phi)
    xk_t1 = shift_back_3d(xk_t1)
    xk_t2 = unit(p['unit1'], xk)
    xk_t2 = unit(p['unit2'], xk_t2 - (dk - bk))
    xk = xk - p['step'] * xk_t1 - p['step'] * p['mu'] * xk_t2
    xk_c = unit(p['unit1'], xk)
    thr = p['lamd'] / (p['mu'] + 1e-6)
    t = xk_c + bk
    dk = jnp.sign(t) * jnp.maximum(jnp.abs(t) - thr, 0.0)
    bk = bk + xk_c - dk
    return xk, dk, bk


def ublock(p, x):
    B, h_inp, w_inp, C = x.shape
    pad_h = (8 - h_inp % 8) % 8
    pad_w = (8 - w_inp % 8) % 8
    if pad_h or pad_w:
        x = jnp.pad(x, ((0, 0), (0, pad_h), (0, pad_w), (0, 0)), mode='reflect')
    xk1 = ln_cl(conv2x2_s2(basic_block(p['d1_bb'], x), p['d1_w'], p['d1_b']),
                p['d1_lnw'], p['d1_lnb'])
    xk2 = ln_cl(conv2x2_s2(basic_block(p['d2_bb'], xk1), p['d2_w'], p['d2_b']),
                p['d2_lnw'], p['d2_lnb'])
    xk3 = ln_cl(conv2x2_s2(basic_block(p['d3_bb'], xk2), p['d3_w'], p['d3_b']),
                p['d3_lnw'], p['d3_lnb'])
    xk4 = basic_block(p['mid_bb'], xk3)
    xk5 = basic_block(p['u1_bb'], ln_cl(convT2x2_s2(xk4, p['u1_w'], p['u1_b']),
                                        p['u1_lnw'], p['u1_lnb'])) + xk2
    xk6 = basic_block(p['u2_bb'], ln_cl(convT2x2_s2(xk5, p['u2_w'], p['u2_b']),
                                        p['u2_lnw'], p['u2_lnb'])) + xk1
    xo = basic_block(p['u3_bb'], ln_cl(convT2x2_s2(xk6, p['u3_w'], p['u3_b']),
                                       p['u3_lnw'], p['u3_lnb'])) + x
    return xo[:, :h_inp, :w_inp, :]


def initial(p, y, Phi_cl):
    nC, step = 28, 2
    B, R, W = y.shape
    y2 = y / nC * 2
    width = max(W - (nC - 1) * step, 0)
    col = jnp.arange(W)[:, None]
    ch = jnp.arange(nC)[None, :]
    mask = ((col >= step * ch) & (col < step * ch + width)).astype(y2.dtype)  # [W, nC]
    y_shift = y2[:, :, :, None] * mask[None, None, :, :]                       # [B,R,W,nC]
    return conv1x1(jnp.concatenate([y_shift, Phi_cl], axis=-1),
                   p['fution_w'], p['fution_b'])


def usbnet_forward(p, y, input_mask):
    Phi, Phi_s = input_mask                          # NCHW at the boundary
    del Phi_s                                        # unused, as in the reference
    Phi_cl = jnp.transpose(Phi, (0, 2, 3, 1))        # one-time layout change
    xk_i = initial(p, y, Phi_cl)
    xk_i = shift_back_3d(xk_i)
    dk = jnp.zeros_like(xk_i)
    bk = jnp.zeros_like(xk_i)
    xk = basic_block(p['pre_bb'], conv3x3(xk_i, p['pre_w'], p['pre_b']))
    inter = []
    for i in range(len(p['iters'])):
        xk_i, dk, bk = iteration_module(p['iters'][i], xk_i, dk, bk, y, Phi_cl)
        b0 = p['blocks0'][i]
        xk = xk + basic_block(b0['bb'], conv3x3(xk_i, b0['w'], b0['b']))
        xk = ublock(p['blocks1'][i], xk)
        b2 = p['blocks2'][i]
        xk_i = conv3x3(basic_block(b2['bb'], ln_cl(xk, b2['lnw'], b2['lnb'])),
                       b2['w'], b2['b'])
        inter.append(xk_i)
    inter = jnp.concatenate(inter, axis=-1)
    m = p['mid']
    inter = basic_block(m['bb'],
                        ln_cl(conv3x3(inter, m['w'], m['b']), m['lnw'], m['lnb']))
    xk = jnp.concatenate([xk, inter], axis=-1)
    po = p['post']
    xk = ublock(po['ublock'], xk)
    xk = ln_cl(xk, po['lnw'], po['lnb'])
    xk = basic_block(po['bb1'], xk)
    xk = conv3x3(xk, po['w1'], po['b1'])
    xk = basic_block(po['bb2'], xk)
    xk = conv3x3(xk, po['w2'], po['b2'])
    xk = xk[:, :, :y.shape[1], :]                    # crop columns to row count
    return jnp.transpose(xk, (0, 3, 1, 2))           # back to NCHW at the boundary


# ----------------------------------------------------------------------------
if __name__ == "__main__":
    key = jax.random.PRNGKey(0)
    k_param, k_y, k_phi = jax.random.split(key, 3)

    # Small shapes consistent with the module: basic_dim is hard-coded to 28,
    # spatial must be >= 2*(28-1) for the dispersion shift to be non-trivial.
    B, R, W = 1, 64, 64
    dim, depth = 32, 2

    rng = ParamRNG(k_param)
    params = init_usbnet(rng, dim, depth)

    y = jax.random.normal(k_y, (B, R, W), jnp.float32)
    Phi = jax.random.uniform(k_phi, (B, 28, R, W), jnp.float32)
    Phi_s = jnp.sum(Phi ** 2, axis=1)

    out = usbnet_forward(params, y, (Phi, Phi_s))
    out = jax.block_until_ready(out)

    assert out.shape == (B, 28, R, min(W, R)), out.shape
    assert bool(jnp.all(jnp.isfinite(out)))
    print("KERNEL_OK")
</pallas_src>

<mosaic_0001>
module attributes {stable_mosaic.version = 11 : i64} {
  func.func @_matmul_kernel(%arg0: i32, %arg1: memref<512x56xf32, #tpu.memory_space<vmem>>, %arg2: memref<56x28xbf16, #tpu.memory_space<vmem>>, %arg3: memref<1x28xf32, #tpu.memory_space<vmem>>, %arg4: memref<512x28xf32, #tpu.memory_space<vmem>>) attributes {dimension_semantics = [#tpu.dimension_semantics<parallel>], iteration_bounds = array<i64: 8>, scalar_prefetch = 0 : i64, scratch_operands = 0 : i64, tpu.core_type = #tpu.core_type<tc>, window_params = [{transform_indices = @transform_0, window_bounds = array<i64: 512, 56>}, {pipeline_mode = #tpu.pipeline_mode<synchronous>, transform_indices = @transform_1, window_bounds = array<i64: 56, 28>}, {pipeline_mode = #tpu.pipeline_mode<synchronous>, transform_indices = @transform_2, window_bounds = array<i64: 1, 28>}, {transform_indices = @transform_3, window_bounds = array<i64: 512, 28>}]} {
    %c0 = arith.constant 0 : index
    %c0_0 = arith.constant 0 : index
    %0 = vector.load %arg1[%c0, %c0_0] : memref<512x56xf32, #tpu.memory_space<vmem>>, vector<512x56xf32>
    %1 = arith.truncf %0 : vector<512x56xf32> to vector<512x56xbf16>
    %c0_1 = arith.constant 0 : index
    %c0_2 = arith.constant 0 : index
    %2 = vector.load %arg2[%c0_1, %c0_2] : memref<56x28xbf16, #tpu.memory_space<vmem>>, vector<56x28xbf16>
    %cst = arith.constant dense<0.000000e+00> : vector<512x28xf32>
    %3 = tpu.matmul %1, %2, %cst {dimension_numbers = #tpu.dot_dimension_numbers<[1], [0], [0], [1], [0, 0, 1, 1], [], []>} : vector<512x56xbf16>, vector<56x28xbf16>, vector<512x28xf32> -> vector<512x28xf32>
    %c0_3 = arith.constant 0 : index
    %c0_4 = arith.constant 0 : index
    %4 = vector.load %arg3[%c0_3, %c0_4] : memref<1x28xf32, #tpu.memory_space<vmem>>, vector<1x28xf32>
    %5 = vector.broadcast %4 : vector<1x28xf32> to vector<512x28xf32>
    %6 = arith.addf %3, %5 : vector<512x28xf32>
    %c0_5 = arith.constant 0 : index
    %c0_6 = arith.constant 0 : index
    %7 = vector.load %arg4[%c0_5, %c0_6] : memref<512x28xf32, #tpu.memory_space<vmem>>, vector<512x28xf32>
    tpu.vector_store %arg4[%c0_5, %c0_6], %6 {strides = array<i32>} : memref<512x28xf32, #tpu.memory_space<vmem>>, vector<512x28xf32>,
    return
  }
  func.func @transform_0(%arg0: i32) -> (i32, i32) {
    %c0_i32 = arith.constant 0 : i32
    %c0_i32_0 = arith.constant 0 : i32
    return %arg0, %c0_i32 : i32, i32
  }
  func.func @transform_1(%arg0: i32) -> (i32, i32) {
    %c0_i32 = arith.constant 0 : i32
    %c0_i32_0 = arith.constant 0 : i32
    %c0_i32_1 = arith.constant 0 : i32
    return %c0_i32, %c0_i32_0 : i32, i32
  }
  func.func @transform_2(%arg0: i32) -> (i32, i32) {
    %c0_i32 = arith.constant 0 : i32
    %c0_i32_0 = arith.constant 0 : i32
    %c0_i32_1 = arith.constant 0 : i32
    return %c0_i32, %c0_i32_0 : i32, i32
  }
  func.func @transform_3(%arg0: i32) -> (i32, i32) {
    %c0_i32 = arith.constant 0 : i32
    %c0_i32_0 = arith.constant 0 : i32
    return %arg0, %c0_i32 : i32, i32
  }
}

</mosaic_0001>

<bundles_post_ra>
// kernel: pmatmul.1
= control target key start
LH: loop header
LB: loop body
LE: loop exit
PB: predicated region body
PF: predicated region fallthrough
CT: control target
= control target key end

     0   :  { %s1023_s12 = smov 0   ;;  %s1356_s0 = inlined_call_operand.vmem [shape: f32[4096,56], index: 0, kind: input, shape index: {}]   ;;  %s1357_s1 = inlined_call_operand.vmem [shape: bf16[56,28], index: 1, kind: input, shape index: {}]   ;;  %s1358_s2 = inlined_call_operand.vmem [shape: f32[1,28], index: 2, kind: input, shape index: {}]   ;;  %s1359_s3 = inlined_call_operand.vmem [shape: f32[4096,28], index: 3, kind: output, shape index: {}]  }
   0x1 LB: > { %s817_s13 = sadd.s32 4294967295, %s1001_s12   ;;  %p821_p0 = scmp.ge.s32.totalorder %s1001_s12, 1  ;;  %s1001_s12 = sphi %s1023_s12, %s13_s12  }
   0x2   : > { %p138_p1 = scmp.lt.s32.totalorder %s1001_s12, 9 }
   0x4   : > { %p139_p2 = pnand %p821_p0, %p138_p1 }
   0x5   : > { %s822_s18 = sshll.u32 (!%p139_p2), %s817_s13, 6 }
   0x6   : > { %142 = sbr.rel (%p139_p2) target bundleno = 286 (0x11e), region = 32  ;;  %p163_p3 = scmp.lt.s32.totalorder (!%p139_p2), %s822_s18, 511 }
   0xb   : > { %v991_v0 = vld [vmem:[%s1357_s1 + $0x18] ss:$0 sps:$4 sm:$0xff]   ;;  %vm403_vm0 = vcmask 1043456   ;;  %v992_v1 = vld [vmem:[%s1357_s1 + $0x10] sm:$0xff]   ;;  %v993_v3 = vld [vmem:[%s1357_s1 + $0x8] sm:$0xff]   ;;  %s1361_s18 = smov (!%p163_p3, %s822_s18), 511 }
   0xc   : > { %981 = vmatprep.subr.msk.bf16.mxu0 %vm403_vm0, %v991_v0  ;;  %982 = vmatprep.subr.msk.bf16.mxu1 %vm403_vm0, %v991_v0  ;;  %v405_v2 = vsel %vm403_vm0, %v991_v0, 0  ;;  %v994_v4 = vld [vmem:[%s1357_s1] sm:$0xff]   ;;  %s823_s23 = sshll.u32 %s1361_s18, 3  ;;  %vm306_vm1 = vcmask 457728   ;;  %vm696_vm2 = vcmask 228352  }
   0xd   : > { %902 = vmatpush3.bf16.msra.mxu0 %v405_v2  ;;  %977 = vmatpush3.bf16.msra.mxu1 %v405_v2  ;;  %s1051_s26 = scalar_lea.vmem %s1356_s0, %s823_s23  ;;  %s1159_s4 = scalar_lea.vmem %s1359_s3, %s823_s23 }
   0xe   : > { %903 = vmatprep.subr.bf16.mxu0 %v992_v1  ;;  %974 = vmatprep.subr.bf16.mxu1 %v992_v1  ;;  %v175_v5 = vld [vmem:[%s1051_s26] sm:$0xff]  ;;  %v176_v6 = vld [vmem:[%s1051_s26 + $0x8] sm:$0xff]  ;;  %v177_v10 = vld [vmem:[%s1051_s26 + $0x10] sm:$0xff] }
   0xf   : > { %v207_v7 = vld [vmem:[%s1051_s26 + $0x100] sm:$0xff]  ;;  %v239_v8 = vpack.c.bf16 %v176_v6, %v175_v5  ;;  %v208_v9 = vld [vmem:[%s1051_s26 + $0x108] sm:$0xff]  ;;  %v178_v11 = vld [vmem:[%s1051_s26 + $0x18] sm:$0xff] }
  0x10   : > { %v255_v12 = vpack.c.bf16 %v208_v9, %v207_v7  ;;  %v209_v13 = vld [vmem:[%s1051_s26 + $0x110] sm:$0xff]  ;;  %v210_v14 = vld [vmem:[%s1051_s26 + $0x118] sm:$0xff]  ;;  %v179_v15 = vld [vmem:[%s1051_s26 + $0x20] sm:$0xff]  ;;  %v240_v19 = vpack.c.bf16 %v178_v11, %v177_v10 }
  0x11   : > { %904 = vmatpush3.bf16.msra.mxu0 %v992_v1  ;;  %978 = vmatpush3.bf16.msra.mxu1 %v992_v1  ;;  %v180_v16 = vld [vmem:[%s1051_s26 + $0x28] sm:$0xff]  ;;  %v211_v17 = vld [vmem:[%s1051_s26 + $0x120] sm:$0xff]  ;;  %v256_v20 = vpack.c.bf16 %v210_v14, %v209_v13  ;;  %v181_v23 = vld [vmem:[%s1051_s26 + $0x30] sm:$0xff] }
  0x12   : > { %905 = vmatprep.subr.bf16.mxu0 %v993_v3  ;;  %975 = vmatprep.subr.bf16.mxu1 %v993_v3  ;;  %v212_v18 = vld [vmem:[%s1051_s26 + $0x128] sm:$0xff]  ;;  %v241_v21 = vpack.c.bf16 %v180_v16, %v179_v15  ;;  %v182_v24 = vld [vmem:[%s1051_s26 + $0x38] sm:$0xff]  ;;  %v213_v25 = vld [vmem:[%s1051_s26 + $0x130] sm:$0xff] }
  0x13   : > { %909 = vmatprep.mubr.msk.bf16.mxu0 %vm306_vm1, %v239_v8  ;;  %941 = vmatprep.mubr.msk.bf16.mxu1 %vm306_vm1, %v255_v12  ;;  %v257_v22 = vpack.c.bf16 %v212_v18, %v211_v17  ;;  %v214_v26 = vld [vmem:[%s1051_s26 + $0x138] sm:$0xff]  ;;  %v183_v27 = vld [vmem:[%s1051_s26 + $0x40] sm:$0xff]  ;;  %v184_v28 = vld [vmem:[%s1051_s26 + $0x48] sm:$0xff]  ;;  %v242_v31 = vpack.c.bf16 %v182_v24, %v181_v23 }
  0x14   : > { %v215_v29 = vld [vmem:[%s1051_s26 + $0x140] sm:$0xff]  ;;  %v216_v30 = vld [vmem:[%s1051_s26 + $0x148] sm:$0xff]  ;;  %v258_v32 = vpack.c.bf16 %v214_v26, %v213_v25  ;;  %v243_v33 = vpack.c.bf16 %v184_v28, %v183_v27  ;;  %v185_v35 = vld [vmem:[%s1051_s26 + $0x50] sm:$0xff] }
  0x15   : > { %906 = vmatpush3.bf16.msra.mxu0 %v993_v3  ;;  %979 = vmatpush3.bf16.msra.mxu1 %v993_v3  ;;  %v259_v34 = vpack.c.bf16 %v216_v30, %v215_v29  ;;  %v186_v36 = vld [vmem:[%s1051_s26 + $0x58] sm:$0xff]  ;;  %v217_v37 = vld [vmem:[%s1051_s26 + $0x150] sm:$0xff]  ;;  %v187_v39 = vld [vmem:[%s1051_s26 + $0x60] sm:$0xff] }
  0x16   : > { %907 = vmatprep.subr.bf16.mxu0 %v994_v4  ;;  %976 = vmatprep.subr.bf16.mxu1 %v994_v4  ;;  %v218_v38 = vld [vmem:[%s1051_s26 + $0x158] sm:$0xff]  ;;  %v188_v40 = vld [vmem:[%s1051_s26 + $0x68] sm:$0xff]  ;;  %v219_v41 = vld [vmem:[%s1051_s26 + $0x160] sm:$0xff]  ;;  %v244_v43 = vpack.c.bf16 %v186_v36, %v185_v35 }
  0x17   : > { %v220_v42 = vld [vmem:[%s1051_s26 + $0x168] sm:$0xff]  ;;  %v260_v44 = vpack.c.bf16 %v218_v38, %v217_v37  ;;  %v245_v45 = vpack.c.bf16 %v188_v40, %v187_v39  ;;  %v189_v47 = vld [vmem:[%s1051_s26 + $0x70] sm:$0xff]  ;;  %v190_v48 = vld [vmem:[%s1051_s26 + $0x78] sm:$0xff] }
  0x18   : > { %v261_v46 = vpack.c.bf16 %v220_v42, %v219_v41  ;;  %v221_v49 = vld [vmem:[%s1051_s26 + $0x170] sm:$0xff]  ;;  %v222_v50 = vld [vmem:[%s1051_s26 + $0x178] sm:$0xff]  ;;  %v191_v51 = vld [vmem:[%s1051_s26 + $0x80] sm:$0xff]  ;;  %v246_v55 = vpack.c.bf16 %v190_v48, %v189_v47 }
  0x19   : > { %908 = vmatpush3.bf16.msra.mxu0 %v994_v4  ;;  %980 = vmatpush3.bf16.msra.mxu1 %v994_v4  ;;  %v192_v52 = vld [vmem:[%s1051_s26 + $0x88] sm:$0xff]  ;;  %v223_v53 = vld [vmem:[%s1051_s26 + $0x180] sm:$0xff]  ;;  %v262_v56 = vpack.c.bf16 %v222_v50, %v221_v49  ;;  %v193_v59 = vld [vmem:[%s1051_s26 + $0x90] sm:$0xff] }
  0x1a   : > { %v224_v54 = vld [vmem:[%s1051_s26 + $0x188] sm:$0xff]  ;;  %v247_v57 = vpack.c.bf16 %v192_v52, %v191_v51  ;;  %v194_v60 = vld [vmem:[%s1051_s26 + $0x98] sm:$0xff]  ;;  %v225_v61 = vld [vmem:[%s1051_s26 + $0x190] sm:$0xff] }
  0x1b   : > { %v263_v58 = vpack.c.bf16 %v224_v54, %v223_v53  ;;  %v226_v62 = vld [vmem:[%s1051_s26 + $0x198] sm:$0xff]  ;;  %v195_v63 = vld [vmem:[%s1051_s26 + $0xa0] sm:$0xff]  ;;  %v196_v0 = vld [vmem:[%s1051_s26 + $0xa8] sm:$0xff]  ;;  %v248_v3 = vpack.c.bf16 %v194_v60, %v193_v59 }
  0x1c   : > { %910 = vmatmul.mubr.msk.bf16.vlgmr.msra.gmra.mxu0 %vm306_vm1, %v240_v19  ;;  %942 = vmatmul.mubr.msk.bf16.vlgmr.msra.gmra.mxu1 %vm306_vm1, %v256_v20  ;;  %v227_v1 = vld [vmem:[%s1051_s26 + $0x1a0] sm:$0xff]  ;;  %v228_v2 = vld [vmem:[%s1051_s26 + $0x1a8] sm:$0xff]  ;;  %v264_v4 = vpack.c.bf16 %v226_v62, %v225_v61  ;;  %v249_v5 = vpack.c.bf16 %v196_v0, %v195_v63  ;;  %v197_v7 = vld [vmem:[%s1051_s26 + $0xb0] sm:$0xff] }
  0x1d   : > { %913 = vmatprep.mubr.msk.bf16.mxu0 %vm306_vm1, %v241_v21  ;;  %945 = vmatprep.mubr.msk.bf16.mxu1 %vm306_vm1, %v257_v22  ;;  %v265_v6 = vpack.c.bf16 %v228_v2, %v227_v1  ;;  %v198_v8 = vld [vmem:[%s1051_s26 + $0xb8] sm:$0xff]  ;;  %v229_v9 = vld [vmem:[%s1051_s26 + $0x1b0] sm:$0xff]  ;;  %v199_v11 = vld [vmem:[%s1051_s26 + $0xc0] sm:$0xff] }
  0x1e   : > { %v230_v10 = vld [vmem:[%s1051_s26 + $0x1b8] sm:$0xff]  ;;  %v200_v12 = vld [vmem:[%s1051_s26 + $0xc8] sm:$0xff]  ;;  %v231_v13 = vld [vmem:[%s1051_s26 + $0x1c0] sm:$0xff]  ;;  %v250_v15 = vpack.c.bf16 %v198_v8, %v197_v7 }
  0x1f   : > { %v232_v14 = vld [vmem:[%s1051_s26 + $0x1c8] sm:$0xff]  ;;  %v266_v16 = vpack.c.bf16 %v230_v10, %v229_v9  ;;  %v251_v17 = vpack.c.bf16 %v200_v12, %v199_v11  ;;  %v201_v19 = vld [vmem:[%s1051_s26 + $0xd0] sm:$0xff]  ;;  %v202_v20 = vld [vmem:[%s1051_s26 + $0xd8] sm:$0xff] }
  0x20   : > { %v267_v18 = vpack.c.bf16 %v232_v14, %v231_v13  ;;  %v233_v21 = vld [vmem:[%s1051_s26 + $0x1d0] sm:$0xff]  ;;  %v234_v22 = vld [vmem:[%s1051_s26 + $0x1d8] sm:$0xff]  ;;  %v203_v23 = vld [vmem:[%s1051_s26 + $0xe0] sm:$0xff]  ;;  %v252_v27 = vpack.c.bf16 %v202_v20, %v201_v19 }
  0x21   : > { %v204_v24 = vld [vmem:[%s1051_s26 + $0xe8] sm:$0xff]  ;;  %v235_v25 = vld [vmem:[%s1051_s26 + $0x1e0] sm:$0xff]  ;;  %v268_v28 = vpack.c.bf16 %v234_v22, %v233_v21 }
  0x22   : > { %v236_v26 = vld [vmem:[%s1051_s26 + $0x1e8] sm:$0xff]  ;;  %v253_v29 = vpack.c.bf16 %v204_v24, %v203_v23  ;;  %v1152_v37 = vld [vmem:[%s1358_s2] ss:$0 sm:$0xff] }
  0x23   : > { %v269_v30 = vpack.c.bf16 %v236_v26, %v235_v25 }
  0x24   : > { %914 = vmatmul.mubr.msk.bf16.gmra.mxu0 %vm306_vm1, %v242_v31  ;;  %946 = vmatmul.mubr.msk.bf16.gmra.mxu1 %vm306_vm1, %v258_v32  ;;  %v205_v31 = vld [vmem:[%s1051_s26 + $0xf0] sm:$0xff]  ;;  %v206_v32 = vld [vmem:[%s1051_s26 + $0xf8] sm:$0xff] }
  0x25   : > { %917 = vmatprep.mubr.msk.bf16.mxu0 %vm306_vm1, %v243_v33  ;;  %949 = vmatprep.mubr.msk.bf16.mxu1 %vm306_vm1, %v259_v34  ;;  %v237_v33 = vld [vmem:[%s1051_s26 + $0x1f0] sm:$0xff]  ;;  %v238_v34 = vld [vmem:[%s1051_s26 + $0x1f8] sm:$0xff]  ;;  %v254_v35 = vpack.c.bf16 %v206_v32, %v205_v31 }
  0x26   : > { %v270_v36 = vpack.c.bf16 %v238_v34, %v237_v33 }
  0x2c   : > { %918 = vmatmul.mubr.msk.bf16.gmra.mxu0 %vm306_vm1, %v244_v43  ;;  %950 = vmatmul.mubr.msk.bf16.gmra.mxu1 %vm306_vm1, %v260_v44 }
  0x2d   : > { %921 = vmatprep.mubr.msk.bf16.mxu0 %vm306_vm1, %v245_v45  ;;  %953 = vmatprep.mubr.msk.bf16.mxu1 %vm306_vm1, %v261_v46 }
  0x34   : > { %922 = vmatmul.mubr.msk.bf16.gmra.mxu0 %vm306_vm1, %v246_v55  ;;  %954 = vmatmul.mubr.msk.bf16.gmra.mxu1 %vm306_vm1, %v262_v56 }
  0x35   : > { %925 = vmatprep.mubr.msk.bf16.mxu0 %vm306_vm1, %v247_v57  ;;  %957 = vmatprep.mubr.msk.bf16.mxu1 %vm306_vm1, %v263_v58 }
  0x3c   : > { %926 = vmatmul.mubr.msk.bf16.gmra.mxu0 %vm306_vm1, %v248_v3  ;;  %958 = vmatmul.mubr.msk.bf16.gmra.mxu1 %vm306_vm1, %v264_v4 }
  0x3d   : > { %929 = vmatprep.mubr.msk.bf16.mxu0 %vm306_vm1, %v249_v5  ;;  %961 = vmatprep.mubr.msk.bf16.mxu1 %vm306_vm1, %v265_v6 }
  0x44   : > { %930 = vmatmul.mubr.msk.bf16.gmra.mxu0 %vm306_vm1, %v250_v15  ;;  %962 = vmatmul.mubr.msk.bf16.gmra.mxu1 %vm306_vm1, %v266_v16 }
  0x45   : > { %933 = vmatprep.mubr.msk.bf16.mxu0 %vm306_vm1, %v251_v17  ;;  %965 = vmatprep.mubr.msk.bf16.mxu1 %vm306_vm1, %v267_v18 }
  0x4c   : > { %934 = vmatmul.mubr.msk.bf16.gmra.mxu0 %vm306_vm1, %v252_v27  ;;  %966 = vmatmul.mubr.msk.bf16.gmra.mxu1 %vm306_vm1, %v268_v28 }
  0x4d   : > { %937 = vmatprep.mubr.msk.bf16.mxu0 %vm306_vm1, %v253_v29  ;;  %969 = vmatprep.mubr.msk.bf16.mxu1 %vm306_vm1, %v269_v30 }
  0x54   : > { %938 = vmatmul.mubr.msk.bf16.gmra.mxu0 %vm306_vm1, %v254_v35  ;;  %970 = vmatmul.mubr.msk.bf16.gmra.mxu1 %vm306_vm1, %v270_v36 }
  0xdc   : > { %v911_v38 = vpop.f32.mrf.mxu0  ;;  %v943_v39 = vpop.f32.mrf.mxu1 }
  0xdd   : > { %v450_v40 = vadd.f32 %v911_v38, %v1152_v37  ;;  %v578_v41 = vadd.f32 %v943_v39, %v1152_v37 }
  0xde   : > { %v441_v42 = vpop.f32.mrf.mxu0  ;;  %v569_v43 = vpop.f32.mrf.mxu1 }
  0xdf   : > { %699 = vst.msk [vmem:[%s1159_s4 + $0x10] sm:$0xff] %vm696_vm2, %v450_v40  ;;  %731 = vst.msk [vmem:[%s1159_s4 + $0x110] sm:$0xff] %vm696_vm2, %v578_v41  ;;  %v442_v44 = vadd.f32 %v1152_v37, %v441_v42  ;;  %v570_v45 = vadd.f32 %v1152_v37, %v569_v43 }
  0xe0   : > { %v912_v46 = vpop.f32.mrf.mxu0  ;;  %v944_v47 = vpop.f32.mrf.mxu1 }
  0xe1   : > { %697 = vst.msk [vmem:[%s1159_s4] sm:$0xff] %vm696_vm2, %v442_v44  ;;  %729 = vst.msk [vmem:[%s1159_s4 + $0x100] sm:$0xff] %vm696_vm2, %v570_v45  ;;  %v453_v48 = vadd.f32 %v912_v46, %v1152_v37  ;;  %v581_v49 = vadd.f32 %v944_v47, %v1152_v37 }
  0xe2   : > { %v444_v50 = vpop.f32.mrf.mxu0  ;;  %v572_v51 = vpop.f32.mrf.mxu1 }
  0xe3   : > { %700 = vst.msk [vmem:[%s1159_s4 + $0x18] sm:$0xff] %vm696_vm2, %v453_v48  ;;  %732 = vst.msk [vmem:[%s1159_s4 + $0x118] sm:$0xff] %vm696_vm2, %v581_v49  ;;  %v445_v52 = vadd.f32 %v1152_v37, %v444_v50  ;;  %v573_v53 = vadd.f32 %v1152_v37, %v572_v51 }
  0xe4   : > { %v915_v54 = vpop.f32.mrf.mxu0  ;;  %v947_v55 = vpop.f32.mrf.mxu1 }
  0xe5   : > { %698 = vst.msk [vmem:[%s1159_s4 + $0x8] sm:$0xff] %vm696_vm2, %v445_v52  ;;  %730 = vst.msk [vmem:[%s1159_s4 + $0x108] sm:$0xff] %vm696_vm2, %v573_v53  ;;  %v466_v56 = vadd.f32 %v915_v54, %v1152_v37  ;;  %v594_v57 = vadd.f32 %v947_v55, %v1152_v37 }
  0xe6   : > { %v457_v58 = vpop.f32.mrf.mxu0  ;;  %v585_v59 = vpop.f32.mrf.mxu1 }
  0xe7   : > { %703 = vst.msk [vmem:[%s1159_s4 + $0x30] sm:$0xff] %vm696_vm2, %v466_v56  ;;  %735 = vst.msk [vmem:[%s1159_s4 + $0x130] sm:$0xff] %vm696_vm2, %v594_v57  ;;  %v458_v60 = vadd.f32 %v1152_v37, %v457_v58  ;;  %v586_v61 = vadd.f32 %v1152_v37, %v585_v59 }
  0xe8   : > { %v916_v62 = vpop.f32.mrf.mxu0  ;;  %v948_v63 = vpop.f32.mrf.mxu1 }
  0xe9   : > { %701 = vst.msk [vmem:[%s1159_s4 + $0x20] sm:$0xff] %vm696_vm2, %v458_v60  ;;  %733 = vst.msk [vmem:[%s1159_s4 + $0x120] sm:$0xff] %vm696_vm2, %v586_v61  ;;  %v469_v0 = vadd.f32 %v916_v62, %v1152_v37  ;;  %v597_v1 = vadd.f32 %v948_v63, %v1152_v37 }
  0xea   : > { %v460_v2 = vpop.f32.mrf.mxu0  ;;  %v588_v3 = vpop.f32.mrf.mxu1 }
  0xeb   : > { %704 = vst.msk [vmem:[%s1159_s4 + $0x38] sm:$0xff] %vm696_vm2, %v469_v0  ;;  %736 = vst.msk [vmem:[%s1159_s4 + $0x138] sm:$0xff] %vm696_vm2, %v597_v1  ;;  %v461_v4 = vadd.f32 %v1152_v37, %v460_v2  ;;  %v589_v5 = vadd.f32 %v1152_v37, %v588_v3 }
  0xec   : > { %v919_v6 = vpop.f32.mrf.mxu0  ;;  %v951_v7 = vpop.f32.mrf.mxu1 }
  0xed   : > { %702 = vst.msk [vmem:[%s1159_s4 + $0x28] sm:$0xff] %vm696_vm2, %v461_v4  ;;  %734 = vst.msk [vmem:[%s1159_s4 + $0x128] sm:$0xff] %vm696_vm2, %v589_v5  ;;  %v482_v8 = vadd.f32 %v919_v6, %v1152_v37  ;;  %v610_v9 = vadd.f32 %v951_v7, %v1152_v37 }
  0xee   : > { %v473_v10 = vpop.f32.mrf.mxu0  ;;  %v601_v11 = vpop.f32.mrf.mxu1 }
  0xef   : > { %707 = vst.msk [vmem:[%s1159_s4 + $0x50] sm:$0xff] %vm696_vm2, %v482_v8  ;;  %739 = vst.msk [vmem:[%s1159_s4 + $0x150] sm:$0xff] %vm696_vm2, %v610_v9  ;;  %v474_v12 = vadd.f32 %v1152_v37, %v473_v10  ;;  %v602_v13 = vadd.f32 %v1152_v37, %v601_v11 }
  0xf0   : > { %v920_v14 = vpop.f32.mrf.mxu0  ;;  %v952_v15 = vpop.f32.mrf.mxu1 }
  0xf1   : > { %705 = vst.msk [vmem:[%s1159_s4 + $0x40] sm:$0xff] %vm696_vm2, %v474_v12  ;;  %737 = vst.msk [vmem:[%s1159_s4 + $0x140] sm:$0xff] %vm696_vm2, %v602_v13  ;;  %v485_v16 = vadd.f32 %v920_v14, %v1152_v37  ;;  %v613_v17 = vadd.f32 %v952_v15, %v1152_v37 }
  0xf2   : > { %v476_v18 = vpop.f32.mrf.mxu0  ;;  %v604_v19 = vpop.f32.mrf.mxu1 }
  0xf3   : > { %708 = vst.msk [vmem:[%s1159_s4 + $0x58] sm:$0xff] %vm696_vm2, %v485_v16  ;;  %740 = vst.msk [vmem:[%s1159_s4 + $0x158] sm:$0xff] %vm696_vm2, %v613_v17  ;;  %v477_v20 = vadd.f32 %v1152_v37, %v476_v18  ;;  %v605_v21 = vadd.f32 %v1152_v37, %v604_v19 }
  0xf4   : > { %v923_v22 = vpop.f32.mrf.mxu0  ;;  %v955_v23 = vpop.f32.mrf.mxu1 }
  0xf5   : > { %706 = vst.msk [vmem:[%s1159_s4 + $0x48] sm:$0xff] %vm696_vm2, %v477_v20  ;;  %738 = vst.msk [vmem:[%s1159_s4 + $0x148] sm:$0xff] %vm696_vm2, %v605_v21  ;;  %v498_v24 = vadd.f32 %v923_v22, %v1152_v37  ;;  %v626_v25 = vadd.f32 %v955_v23, %v1152_v37 }
  0xf6   : > { %v489_v26 = vpop.f32.mrf.mxu0  ;;  %v617_v27 = vpop.f32.mrf.mxu1 }
  0xf7   : > { %711 = vst.msk [vmem:[%s1159_s4 + $0x70] sm:$0xff] %vm696_vm2, %v498_v24  ;;  %743 = vst.msk [vmem:[%s1159_s4 + $0x170] sm:$0xff] %vm696_vm2, %v626_v25  ;;  %v490_v28 = vadd.f32 %v1152_v37, %v489_v26  ;;  %v618_v29 = vadd.f32 %v1152_v37, %v617_v27 }
  0xf8   : > { %v924_v30 = vpop.f32.mrf.mxu0  ;;  %v956_v31 = vpop.f32.mrf.mxu1 }
  0xf9   : > { %709 = vst.msk [vmem:[%s1159_s4 + $0x60] sm:$0xff] %vm696_vm2, %v490_v28  ;;  %741 = vst.msk [vmem:[%s1159_s4 + $0x160] sm:$0xff] %vm696_vm2, %v618_v29  ;;  %v501_v32 = vadd.f32 %v924_v30, %v1152_v37  ;;  %v629_v33 = vadd.f32 %v956_v31, %v1152_v37 }
  0xfa   : > { %v492_v34 = vpop.f32.mrf.mxu0  ;;  %v620_v35 = vpop.f32.mrf.mxu1 }
  0xfb   : > { %712 = vst.msk [vmem:[%s1159_s4 + $0x78] sm:$0xff] %vm696_vm2, %v501_v32  ;;  %744 = vst.msk [vmem:[%s1159_s4 + $0x178] sm:$0xff] %vm696_vm2, %v629_v33  ;;  %v493_v36 = vadd.f32 %v1152_v37, %v492_v34  ;;  %v621_v38 = vadd.f32 %v1152_v37, %v620_v35 }
  0xfc   : > { %v927_v39 = vpop.f32.mrf.mxu0  ;;  %v959_v40 = vpop.f32.mrf.mxu1 }
  0xfd   : > { %710 = vst.msk [vmem:[%s1159_s4 + $0x68] sm:$0xff] %vm696_vm2, %v493_v36  ;;  %742 = vst.msk [vmem:[%s1159_s4 + $0x168] sm:$0xff] %vm696_vm2, %v621_v38  ;;  %v514_v41 = vadd.f32 %v927_v39, %v1152_v37  ;;  %v642_v42 = vadd.f32 %v959_v40, %v1152_v37 }
  0xfe   : > { %v505_v43 = vpop.f32.mrf.mxu0  ;;  %v633_v44 = vpop.f32.mrf.mxu1 }
  0xff   : > { %715 = vst.msk [vmem:[%s1159_s4 + $0x90] sm:$0xff] %vm696_vm2, %v514_v41  ;;  %747 = vst.msk [vmem:[%s1159_s4 + $0x190] sm:$0xff] %vm696_vm2, %v642_v42  ;;  %v506_v45 = vadd.f32 %v1152_v37, %v505_v43  ;;  %v634_v46 = vadd.f32 %v1152_v37, %v633_v44 }
 0x100   : > { %v928_v47 = vpop.f32.mrf.mxu0  ;;  %v960_v48 = vpop.f32.mrf.mxu1 }
 0x101   : > { %713 = vst.msk [vmem:[%s1159_s4 + $0x80] sm:$0xff] %vm696_vm2, %v506_v45  ;;  %745 = vst.msk [vmem:[%s1159_s4 + $0x180] sm:$0xff] %vm696_vm2, %v634_v46  ;;  %v517_v49 = vadd.f32 %v928_v47, %v1152_v37  ;;  %v645_v50 = vadd.f32 %v960_v48, %v1152_v37 }
 0x102   : > { %v508_v51 = vpop.f32.mrf.mxu0  ;;  %v636_v52 = vpop.f32.mrf.mxu1 }
 0x103   : > { %716 = vst.msk [vmem:[%s1159_s4 + $0x98] sm:$0xff] %vm696_vm2, %v517_v49  ;;  %748 = vst.msk [vmem:[%s1159_s4 + $0x198] sm:$0xff] %vm696_vm2, %v645_v50  ;;  %v509_v53 = vadd.f32 %v1152_v37, %v508_v51  ;;  %v637_v54 = vadd.f32 %v1152_v37, %v636_v52 }
 0x104   : > { %v931_v55 = vpop.f32.mrf.mxu0  ;;  %v963_v56 = vpop.f32.mrf.mxu1 }
 0x105   : > { %714 = vst.msk [vmem:[%s1159_s4 + $0x88] sm:$0xff] %vm696_vm2, %v509_v53  ;;  %746 = vst.msk [vmem:[%s1159_s4 + $0x188] sm:$0xff] %vm696_vm2, %v637_v54  ;;  %v530_v57 = vadd.f32 %v931_v55, %v1152_v37  ;;  %v658_v58 = vadd.f32 %v963_v56, %v1152_v37 }
 0x106   : > { %v521_v59 = vpop.f32.mrf.mxu0  ;;  %v649_v60 = vpop.f32.mrf.mxu1 }
 0x107   : > { %719 = vst.msk [vmem:[%s1159_s4 + $0xb0] sm:$0xff] %vm696_vm2, %v530_v57  ;;  %751 = vst.msk [vmem:[%s1159_s4 + $0x1b0] sm:$0xff] %vm696_vm2, %v658_v58  ;;  %v522_v61 = vadd.f32 %v1152_v37, %v521_v59  ;;  %v650_v62 = vadd.f32 %v1152_v37, %v649_v60 }
 0x108   : > { %v932_v63 = vpop.f32.mrf.mxu0  ;;  %v964_v0 = vpop.f32.mrf.mxu1 }
 0x109   : > { %717 = vst.msk [vmem:[%s1159_s4 + $0xa0] sm:$0xff] %vm696_vm2, %v522_v61  ;;  %749 = vst.msk [vmem:[%s1159_s4 + $0x1a0] sm:$0xff] %vm696_vm2, %v650_v62  ;;  %v533_v1 = vadd.f32 %v932_v63, %v1152_v37  ;;  %v661_v2 = vadd.f32 %v964_v0, %v1152_v37 }
 0x10a   : > { %v524_v3 = vpop.f32.mrf.mxu0  ;;  %v652_v4 = vpop.f32.mrf.mxu1 }
 0x10b   : > { %720 = vst.msk [vmem:[%s1159_s4 + $0xb8] sm:$0xff] %vm696_vm2, %v533_v1  ;;  %752 = vst.msk [vmem:[%s1159_s4 + $0x1b8] sm:$0xff] %vm696_vm2, %v661_v2  ;;  %v525_v5 = vadd.f32 %v1152_v37, %v524_v3  ;;  %v653_v6 = vadd.f32 %v1152_v37, %v652_v4 }
 0x10c   : > { %v935_v7 = vpop.f32.mrf.mxu0  ;;  %v967_v8 = vpop.f32.mrf.mxu1 }
 0x10d   : > { %718 = vst.msk [vmem:[%s1159_s4 + $0xa8] sm:$0xff] %vm696_vm2, %v525_v5  ;;  %750 = vst.msk [vmem:[%s1159_s4 + $0x1a8] sm:$0xff] %vm696_vm2, %v653_v6  ;;  %v546_v9 = vadd.f32 %v935_v7, %v1152_v37  ;;  %v674_v10 = vadd.f32 %v967_v8, %v1152_v37 }
 0x10e   : > { %v537_v11 = vpop.f32.mrf.mxu0  ;;  %v665_v12 = vpop.f32.mrf.mxu1 }
 0x10f   : > { %723 = vst.msk [vmem:[%s1159_s4 + $0xd0] sm:$0xff] %vm696_vm2, %v546_v9  ;;  %755 = vst.msk [vmem:[%s1159_s4 + $0x1d0] sm:$0xff] %vm696_vm2, %v674_v10  ;;  %v538_v13 = vadd.f32 %v1152_v37, %v537_v11  ;;  %v666_v14 = vadd.f32 %v1152_v37, %v665_v12 }
 0x110   : > { %v936_v15 = vpop.f32.mrf.mxu0  ;;  %v968_v16 = vpop.f32.mrf.mxu1 }
 0x111   : > { %721 = vst.msk [vmem:[%s1159_s4 + $0xc0] sm:$0xff] %vm696_vm2, %v538_v13  ;;  %753 = vst.msk [vmem:[%s1159_s4 + $0x1c0] sm:$0xff] %vm696_vm2, %v666_v14  ;;  %v549_v17 = vadd.f32 %v936_v15, %v1152_v37  ;;  %v677_v18 = vadd.f32 %v968_v16, %v1152_v37 }
 0x112   : > { %v540_v19 = vpop.f32.mrf.mxu0  ;;  %v668_v20 = vpop.f32.mrf.mxu1 }
 0x113   : > { %724 = vst.msk [vmem:[%s1159_s4 + $0xd8] sm:$0xff] %vm696_vm2, %v549_v17  ;;  %756 = vst.msk [vmem:[%s1159_s4 + $0x1d8] sm:$0xff] %vm696_vm2, %v677_v18  ;;  %v541_v21 = vadd.f32 %v1152_v37, %v540_v19  ;;  %v669_v22 = vadd.f32 %v1152_v37, %v668_v20 }
 0x114   : > { %v939_v23 = vpop.f32.mrf.mxu0  ;;  %v971_v24 = vpop.f32.mrf.mxu1 }
 0x115   : > { %722 = vst.msk [vmem:[%s1159_s4 + $0xc8] sm:$0xff] %vm696_vm2, %v541_v21  ;;  %754 = vst.msk [vmem:[%s1159_s4 + $0x1c8] sm:$0xff] %vm696_vm2, %v669_v22  ;;  %v562_v25 = vadd.f32 %v939_v23, %v1152_v37  ;;  %v690_v26 = vadd.f32 %v971_v24, %v1152_v37 }
 0x116   : > { %v553_v27 = vpop.f32.mrf.mxu0  ;;  %v681_v28 = vpop.f32.mrf.mxu1 }
 0x117   : > { %727 = vst.msk [vmem:[%s1159_s4 + $0xf0] sm:$0xff] %vm696_vm2, %v562_v25  ;;  %759 = vst.msk [vmem:[%s1159_s4 + $0x1f0] sm:$0xff] %vm696_vm2, %v690_v26  ;;  %v554_v29 = vadd.f32 %v1152_v37, %v553_v27  ;;  %v682_v30 = vadd.f32 %v1152_v37, %v681_v28 }
 0x118   : > { %v940_v31 = vpop.f32.mrf.mxu0  ;;  %v972_v32 = vpop.f32.mrf.mxu1 }
 0x119   : > { %725 = vst.msk [vmem:[%s1159_s4 + $0xe0] sm:$0xff] %vm696_vm2, %v554_v29  ;;  %757 = vst.msk [vmem:[%s1159_s4 + $0x1e0] sm:$0xff] %vm696_vm2, %v682_v30  ;;  %v565_v33 = vadd.f32 %v940_v31, %v1152_v37  ;;  %v693_v34 = vadd.f32 %v972_v32, %v1152_v37 }
 0x11a   : > { %v556_v35 = vpop.f32.mrf.mxu0  ;;  %v684_v36 = vpop.f32.mrf.mxu1 }
 0x11b   : > { %728 = vst.msk [vmem:[%s1159_s4 + $0xf8] sm:$0xff] %vm696_vm2, %v565_v33  ;;  %760 = vst.msk [vmem:[%s1159_s4 + $0x1f8] sm:$0xff] %vm696_vm2, %v693_v34  ;;  %v557_v38 = vadd.f32 %v1152_v37, %v556_v35  ;;  %v685_v39 = vadd.f32 %v1152_v37, %v684_v36 }
 0x11d   : > { %726 = vst.msk [vmem:[%s1159_s4 + $0xe8] sm:$0xff] %vm696_vm2, %v557_v38  ;;  %758 = vst.msk [vmem:[%s1159_s4 + $0x1e8] sm:$0xff] %vm696_vm2, %v685_v39 }
 0x11e PF: > { %s13_s12 = sadd.s32 1, %s1001_s12  }
 0x11f   : > { %p10_p4 = scmp.ge.s32.totalorder %s13_s12, 10  }
 0x121   :  { %12 = sbr.rel (!%p10_p4) target bundleno = 1 (0x1), region = 62 }

</bundles_post_ra>
